<compile_context>
chip_gen: v6e
topology: v6e:2x2x1
jax: 0.10.0
libtpu: 0.0.40
codegen_flags: <defaults>
</compile_context>

<pallas_src>
import functools

import jax
import jax.numpy as jnp
from jax.experimental import pallas as pl
from jax.experimental.pallas import tpu as pltpu

LANE = 128


def _round_up(x, m):
    return ((x + m - 1) // m) * m


def _cdiv(a, b):
    return (a + b - 1) // b


def mlp_kernel(x_ref, w1_ref, b1_ref, w2_ref, b2_ref, w3_ref, b3_ref, o_ref):
    # Layer 1: Linear (bf16 MXU, f32 acc) + bias + ReLU in f32. Dropout = id.
    x = x_ref[...].astype(jnp.bfloat16)
    h1 = jnp.dot(x, w1_ref[...], preferred_element_type=jnp.float32)
    h1 = jnp.maximum(h1 + b1_ref[...], 0.0)
    # Layer 2: Linear + ReLU. Dropout = identity (eval mode).
    h2 = jnp.dot(h1.astype(jnp.bfloat16), w2_ref[...],
                 preferred_element_type=jnp.float32)
    h2 = jnp.maximum(h2 + b2_ref[...], 0.0)
    # Layer 3: Linear -> lane-padded logits.
    out = jnp.dot(h2.astype(jnp.bfloat16), w3_ref[...],
                  preferred_element_type=jnp.float32)
    o_ref[...] = (out + b3_ref[...]).astype(o_ref.dtype)


def prepare_params(w1, b1, w2, b2, w3, b3):
    """One-time parameter prep, hoisted out of the per-call forward path.

    - Weights cast to bf16 (native MXU operands, half the DMA bytes).
    - Final layer zero-padded to a multiple of 128 lanes so the output store
      is an unmasked, lane-dense vst.
    - Biases kept in f32 (the epilogue runs in f32).
    Returns (w1, b1, w2, b2, w3_padded, b3_padded, out_dim).
    """
    out_dim = w3.shape[1]
    out_pad = _round_up(max(out_dim, LANE), LANE)
    w3p = jnp.pad(w3, ((0, 0), (0, out_pad - out_dim)))
    b3p = jnp.pad(b3, ((0, 0), (0, out_pad - out_dim)))
    return (w1.astype(jnp.bfloat16), b1.astype(jnp.float32),
            w2.astype(jnp.bfloat16), b2.astype(jnp.float32),
            w3p.astype(jnp.bfloat16), b3p.astype(jnp.float32), out_dim)


@functools.partial(jax.jit, static_argnames=("out_dim", "tm"))
def mlp_forward(x, w1, b1, w2, b2, w3p, b3p, *, out_dim, tm=256):
    """x: [B, input_dim] f32; weights [in, out] bf16; biases [1, out] f32."""
    B, in_dim = x.shape
    hid = w1.shape[1]
    out_pad = w3p.shape[1]

    # --- Batch tiling: bounded padding + >=2 grid steps when B allows ------
    tm_eff = min(tm, _round_up(B, 8))
    n_tiles = _cdiv(B, tm_eff)
    if n_tiles < 2 and B > 8:
        # Give v7x's second TensorCore something to do (harmless elsewhere).
        n_tiles = 2
    tm_eff = _round_up(_cdiv(B, n_tiles), 8)   # padding bounded by < 8*n_tiles rows
    B_pad = n_tiles * tm_eff
    xp = jnp.pad(x, ((0, B_pad - B), (0, 0))) if B_pad != B else x
    grid = (n_tiles,)

    f32 = jnp.dtype(jnp.float32).itemsize
    bf16 = jnp.dtype(jnp.bfloat16).itemsize
    flops = 2 * B_pad * (in_dim * hid + hid * hid + hid * out_pad)
    bytes_accessed = (
        f32 * B_pad * in_dim                       # x (f32 in HBM)
        + bf16 * (in_dim * hid + hid * hid + hid * out_pad)   # weights (bf16)
        + f32 * (hid + hid + out_pad)              # biases (f32)
        + f32 * B_pad * out_pad                    # output (f32)
    )
    cost = pl.CostEstimate(
        flops=flops, transcendentals=0, bytes_accessed=bytes_accessed)

    out_full = pl.pallas_call(
        mlp_kernel,
        out_shape=jax.ShapeDtypeStruct((B_pad, out_pad), jnp.float32),
        grid=grid,
        in_specs=[
            # x tile: marches over the batch axis.
            pl.BlockSpec((tm_eff, in_dim), lambda i: (i, 0)),
            # Weights / biases: constant block index -> VMEM resident.
            pl.BlockSpec((in_dim, hid), lambda i: (0, 0)),
            pl.BlockSpec((1, hid), lambda i: (0, 0)),
            pl.BlockSpec((hid, hid), lambda i: (0, 0)),
            pl.BlockSpec((1, hid), lambda i: (0, 0)),
            pl.BlockSpec((hid, out_pad), lambda i: (0, 0)),
            pl.BlockSpec((1, out_pad), lambda i: (0, 0)),
        ],
        out_specs=pl.BlockSpec((tm_eff, out_pad), lambda i: (i, 0)),
        compiler_params=pltpu.CompilerParams(
            dimension_semantics=("parallel",)),
        cost_estimate=cost,
    )(xp, w1, b1, w2, b2, w3p, b3p)

    # Strip batch padding and the lane padding on the real logits.
    return out_full[:B, :out_dim]


def init_linear_params(key, fan_in, fan_out):
    """Deterministic init mimicking PyTorch nn.Linear default (uniform bound)."""
    kw, kb = jax.random.split(key)
    bound = 1.0 / jnp.sqrt(fan_in)
    # Stored transposed relative to PyTorch: [in, out]
    w = jax.random.uniform(kw, (fan_in, fan_out), jnp.float32, -bound, bound)
    b = jax.random.uniform(kb, (1, fan_out), jnp.float32, -bound, bound)
    return w, b


if __name__ == "__main__":
    batch = 64
    input_dim = 32
    hidden_dim = 256   # PyTorch module default
    out_dim = 3

    root = jax.random.PRNGKey(0)
    kx, k1, k2, k3 = jax.random.split(root, 4)

    x = jax.random.normal(kx, (batch, input_dim), jnp.float32)
    w1, b1 = init_linear_params(k1, input_dim, hidden_dim)
    w2, b2 = init_linear_params(k2, hidden_dim, hidden_dim)
    w3, b3 = init_linear_params(k3, hidden_dim, out_dim)

    # One-time parameter prep (bf16 cast + lane padding) -- hoisted out of
    # the per-call forward path.
    w1b, b1f, w2b, b2f, w3p, b3p, od = prepare_params(w1, b1, w2, b2, w3, b3)

    out = mlp_forward(x, w1b, b1f, w2b, b2f, w3p, b3p, out_dim=od)
    out = jax.block_until_ready(out)
    assert out.shape == (batch, out_dim)

    # Reference in plain JAX with the same bf16-operand / f32-accumulate math
    # (eval-mode dropout = identity).
    w1r, w2r, w3r = (w.astype(jnp.bfloat16) for w in (w1, w2, w3))
    h1 = jnp.maximum(
        jnp.dot(x.astype(jnp.bfloat16), w1r,
                preferred_element_type=jnp.float32) + b1, 0.0)
    h2 = jnp.maximum(
        jnp.dot(h1.astype(jnp.bfloat16), w2r,
                preferred_element_type=jnp.float32) + b2, 0.0)
    ref = jnp.dot(h2.astype(jnp.bfloat16), w3r,
                  preferred_element_type=jnp.float32) + b3
    assert jnp.allclose(out, ref, atol=2e-3, rtol=2e-3)

    print("KERNEL_OK")
</pallas_src>

<mosaic_0001>
module attributes {stable_mosaic.version = 11 : i64} {
  func.func @mlp_kernel(%arg0: i32, %arg1: memref<32x32xf32, #tpu.memory_space<vmem>>, %arg2: memref<32x256xbf16, #tpu.memory_space<vmem>>, %arg3: memref<1x256xf32, #tpu.memory_space<vmem>>, %arg4: memref<256x256xbf16, #tpu.memory_space<vmem>>, %arg5: memref<1x256xf32, #tpu.memory_space<vmem>>, %arg6: memref<256x128xbf16, #tpu.memory_space<vmem>>, %arg7: memref<1x128xf32, #tpu.memory_space<vmem>>, %arg8: memref<32x128xf32, #tpu.memory_space<vmem>>) attributes {dimension_semantics = [#tpu.dimension_semantics<parallel>], iteration_bounds = array<i64: 2>, scalar_prefetch = 0 : i64, scratch_operands = 0 : i64, tpu.core_type = #tpu.core_type<tc>, window_params = [{transform_indices = @transform_0, window_bounds = array<i64: 32, 32>}, {pipeline_mode = #tpu.pipeline_mode<synchronous>, transform_indices = @transform_1, window_bounds = array<i64: 32, 256>}, {pipeline_mode = #tpu.pipeline_mode<synchronous>, transform_indices = @transform_2, window_bounds = array<i64: 1, 256>}, {pipeline_mode = #tpu.pipeline_mode<synchronous>, transform_indices = @transform_3, window_bounds = array<i64: 256, 256>}, {pipeline_mode = #tpu.pipeline_mode<synchronous>, transform_indices = @transform_4, window_bounds = array<i64: 1, 256>}, {pipeline_mode = #tpu.pipeline_mode<synchronous>, transform_indices = @transform_5, window_bounds = array<i64: 256, 128>}, {pipeline_mode = #tpu.pipeline_mode<synchronous>, transform_indices = @transform_6, window_bounds = array<i64: 1, 128>}, {transform_indices = @transform_7, window_bounds = array<i64: 32, 128>}]} {
    %c0 = arith.constant 0 : index
    %c0_0 = arith.constant 0 : index
    %0 = vector.load %arg1[%c0, %c0_0] : memref<32x32xf32, #tpu.memory_space<vmem>>, vector<32x32xf32>
    %1 = arith.truncf %0 : vector<32x32xf32> to vector<32x32xbf16>
    %c0_1 = arith.constant 0 : index
    %c0_2 = arith.constant 0 : index
    %2 = vector.load %arg2[%c0_1, %c0_2] : memref<32x256xbf16, #tpu.memory_space<vmem>>, vector<32x256xbf16>
    %cst = arith.constant dense<0.000000e+00> : vector<32x256xf32>
    %3 = tpu.matmul %1, %2, %cst {dimension_numbers = #tpu.dot_dimension_numbers<[1], [0], [0], [1], [0, 0, 1, 1], [], []>} : vector<32x32xbf16>, vector<32x256xbf16>, vector<32x256xf32> -> vector<32x256xf32>
    %c0_3 = arith.constant 0 : index
    %c0_4 = arith.constant 0 : index
    %4 = vector.load %arg3[%c0_3, %c0_4] : memref<1x256xf32, #tpu.memory_space<vmem>>, vector<1x256xf32>
    %5 = vector.broadcast %4 : vector<1x256xf32> to vector<32x256xf32>
    %6 = arith.addf %3, %5 : vector<32x256xf32>
    %cst_5 = arith.constant 0.000000e+00 : f32
    %7 = vector.broadcast %cst_5 : f32 to vector<32x256xf32>
    %8 = arith.maximumf %6, %7 : vector<32x256xf32>
    %9 = arith.truncf %8 : vector<32x256xf32> to vector<32x256xbf16>
    %c0_6 = arith.constant 0 : index
    %c0_7 = arith.constant 0 : index
    %10 = vector.load %arg4[%c0_6, %c0_7] : memref<256x256xbf16, #tpu.memory_space<vmem>>, vector<256x256xbf16>
    %cst_8 = arith.constant dense<0.000000e+00> : vector<32x256xf32>
    %11 = tpu.matmul %9, %10, %cst_8 {dimension_numbers = #tpu.dot_dimension_numbers<[1], [0], [0], [1], [0, 0, 1, 1], [], []>} : vector<32x256xbf16>, vector<256x256xbf16>, vector<32x256xf32> -> vector<32x256xf32>
    %c0_9 = arith.constant 0 : index
    %c0_10 = arith.constant 0 : index
    %12 = vector.load %arg5[%c0_9, %c0_10] : memref<1x256xf32, #tpu.memory_space<vmem>>, vector<1x256xf32>
    %13 = vector.broadcast %12 : vector<1x256xf32> to vector<32x256xf32>
    %14 = arith.addf %11, %13 : vector<32x256xf32>
    %cst_11 = arith.constant 0.000000e+00 : f32
    %15 = vector.broadcast %cst_11 : f32 to vector<32x256xf32>
    %16 = arith.maximumf %14, %15 : vector<32x256xf32>
    %17 = arith.truncf %16 : vector<32x256xf32> to vector<32x256xbf16>
    %c0_12 = arith.constant 0 : index
    %c0_13 = arith.constant 0 : index
    %18 = vector.load %arg6[%c0_12, %c0_13] : memref<256x128xbf16, #tpu.memory_space<vmem>>, vector<256x128xbf16>
    %cst_14 = arith.constant dense<0.000000e+00> : vector<32x128xf32>
    %19 = tpu.matmul %17, %18, %cst_14 {dimension_numbers = #tpu.dot_dimension_numbers<[1], [0], [0], [1], [0, 0, 1, 1], [], []>} : vector<32x256xbf16>, vector<256x128xbf16>, vector<32x128xf32> -> vector<32x128xf32>
    %c0_15 = arith.constant 0 : index
    %c0_16 = arith.constant 0 : index
    %20 = vector.load %arg7[%c0_15, %c0_16] : memref<1x128xf32, #tpu.memory_space<vmem>>, vector<1x128xf32>
    %21 = vector.broadcast %20 : vector<1x128xf32> to vector<32x128xf32>
    %22 = arith.addf %19, %21 : vector<32x128xf32>
    %c0_17 = arith.constant 0 : index
    %c0_18 = arith.constant 0 : index
    %23 = vector.load %arg8[%c0_17, %c0_18] : memref<32x128xf32, #tpu.memory_space<vmem>>, vector<32x128xf32>
    tpu.vector_store %arg8[%c0_17, %c0_18], %22 {strides = array<i32>} : memref<32x128xf32, #tpu.memory_space<vmem>>, vector<32x128xf32>,
    return
  }
  func.func @transform_0(%arg0: i32) -> (i32, i32) {
    %c0_i32 = arith.constant 0 : i32
    %c0_i32_0 = arith.constant 0 : i32
    return %arg0, %c0_i32 : i32, i32
  }
  func.func @transform_1(%arg0: i32) -> (i32, i32) {
    %c0_i32 = arith.constant 0 : i32
    %c0_i32_0 = arith.constant 0 : i32
    %c0_i32_1 = arith.constant 0 : i32
    return %c0_i32, %c0_i32_0 : i32, i32
  }
  func.func @transform_2(%arg0: i32) -> (i32, i32) {
    %c0_i32 = arith.constant 0 : i32
    %c0_i32_0 = arith.constant 0 : i32
    %c0_i32_1 = arith.constant 0 : i32
    return %c0_i32, %c0_i32_0 : i32, i32
  }
  func.func @transform_3(%arg0: i32) -> (i32, i32) {
    %c0_i32 = arith.constant 0 : i32
    %c0_i32_0 = arith.constant 0 : i32
    %c0_i32_1 = arith.constant 0 : i32
    return %c0_i32, %c0_i32_0 : i32, i32
  }
  func.func @transform_4(%arg0: i32) -> (i32, i32) {
    %c0_i32 = arith.constant 0 : i32
    %c0_i32_0 = arith.constant 0 : i32
    %c0_i32_1 = arith.constant 0 : i32
    return %c0_i32, %c0_i32_0 : i32, i32
  }
  func.func @transform_5(%arg0: i32) -> (i32, i32) {
    %c0_i32 = arith.constant 0 : i32
    %c0_i32_0 = arith.constant 0 : i32
    %c0_i32_1 = arith.constant 0 : i32
    return %c0_i32, %c0_i32_0 : i32, i32
  }
  func.func @transform_6(%arg0: i32) -> (i32, i32) {
    %c0_i32 = arith.constant 0 : i32
    %c0_i32_0 = arith.constant 0 : i32
    %c0_i32_1 = arith.constant 0 : i32
    return %c0_i32, %c0_i32_0 : i32, i32
  }
  func.func @transform_7(%arg0: i32) -> (i32, i32) {
    %c0_i32 = arith.constant 0 : i32
    %c0_i32_0 = arith.constant 0 : i32
    return %arg0, %c0_i32 : i32, i32
  }
}

</mosaic_0001>

<bundles_post_ra>
// kernel: mlp_forward.1
= control target key start
LH: loop header
LB: loop body
LE: loop exit
PB: predicated region body
PF: predicated region fallthrough
CT: control target
= control target key end

     0   :  { %12 = vsyncpa [#allocation3], 0  ;;  %s1374_s0 = inlined_call_operand.vmem [shape: f32[64,32], index: 0, kind: input, shape index: {}]   ;;  %s1375_s1 = inlined_call_operand.vmem [shape: bf16[32,256], index: 1, kind: input, shape index: {}]   ;;  %s1376_s2 = inlined_call_operand.vmem [shape: f32[1,256], index: 2, kind: input, shape index: {}]   ;;  %s1377_s3 = inlined_call_operand.hbm [shape: bf16[256,256], index: 3, kind: input, shape index: {}]   ;;  %s1378_s4 = inlined_call_operand.vmem [shape: f32[1,256], index: 4, kind: input, shape index: {}]   ;;  %s1379_s5 = inlined_call_operand.hbm [shape: bf16[256,128], index: 5, kind: input, shape index: {}]   ;;  %s1380_s6 = inlined_call_operand.vmem [shape: f32[1,128], index: 6, kind: input, shape index: {}]   ;;  %s1381_s7 = inlined_call_operand.vmem [shape: f32[64,128], index: 7, kind: output, shape index: {}]  }
   0x1   :  { %13 = vsyncpa [#allocation5], 0  ;;  %s1279_s24 = smov 0  }
   0x2 LB: > { %s1232_s25 = smov [#allocation2]   ;;  %s962_s27 = sadd.s32 4294967295, %s1230_s24   ;;  %s1230_s24 = sphi %s1279_s24, %s19_s24  }
   0x3   : > { %s220_s26 = sshll.u32 %s1232_s25, 4  ;;  %p964_p0 = scmp.ge.s32.totalorder %s1230_s24, 1  ;;  %s221_s26 = int_to_ptr.vmem [resolvable:$true] %s220_s26 }
   0x4   : > { %p202_p1 = scmp.lt.s32.totalorder %s1230_s24, 3  ;;  %p1293_p3 = scmp.eq.s32.totalorder %s962_s27, 0 }
   0x5   : > { %s1233_s30 = smov [#allocation4]   ;;  %s1175_s10 = scalar_lea.vmem %s221_s26, 4096 }
   0x6   : > { %p1287_p2 = pnand %p964_p0, %p202_p1  ;;  %s236_s8 = sshll.u32 %s1233_s30, 4  ;;  %s237_s8 = int_to_ptr.vmem [resolvable:$true] %s236_s8 }
   0x7   : > { %p1176_p7 = scmp.ne.s32.totalorder %s221_s26, %s1175_s10  ;;  %p1183_p10 = scmp.lt.s32.totalorder %s221_s26, %s221_s26 }
   0x8   : > { %p1068_p4 = pneg %p1287_p2  ;;  %p1184_p11 = scmp.lt.s32.totalorder %s1175_s10, %s1175_s10 }
   0xa   : > { %p1301_p5 = pnand %p1293_p3, %p1068_p4  ;;  %p1185_p12 = por %p1184_p11, %p1183_p10 }
   0xc   : > { %p1166_p6 = pneg %p1301_p5 }
   0xe   : > { %p1178_p8 = pnand %p1176_p7, %p1166_p6 }
  0x10   : > { %p1179_p9 = pneg %p1178_p8 }
  0x12   : > { %p1186_p13 = pnand %p1185_p12, %p1179_p9 }
  0x14   : > { %1189 = shalt.err (!%p1186_p13)
}
  0x15   : > { %s1234_s11 = smov 128   ;;  %s1235_s12 = smov 8  }
  0x16   : > { %1071 = dma.hbm_to_vmem [thread:$0]  (!%p1301_p5), %s1377_s3, 4096, %s221_s26, [#allocation3], %s1234_s11, %s1234_s11, %s1235_s12  }
  0x17   : > { %s1201_s15 = scalar_lea.vmem %s237_s8, 2048  ;;  %p1209_p7 = scmp.lt.s32.totalorder %s237_s8, %s237_s8 }
  0x18   : > { %p1202_p0 = scmp.ne.s32.totalorder %s237_s8, %s1201_s15  ;;  %p1210_p8 = scmp.lt.s32.totalorder %s1201_s15, %s1201_s15 }
  0x1a   : > { %p1204_p1 = pnand %p1202_p0, %p1166_p6  ;;  %p1211_p10 = por %p1210_p8, %p1209_p7 }
  0x1c   : > { %p1205_p4 = pneg %p1204_p1 }
  0x1e   : > { %p1212_p9 = pnand %p1211_p10, %p1205_p4 }
  0x20   : > { %1215 = shalt.err (!%p1212_p9)
}
  0x21   : > { %s1236_s16 = smov 64   ;;  %s1237_s17 = smov 4  }
  0x22   : > { %1074 = dma.hbm_to_vmem [thread:$0]  (!%p1301_p5), %s1379_s5, 2048, %s237_s8, [#allocation5], %s1236_s16, %s1236_s16, %s1237_s17  }
  0x23   : > { %264 = sbr.rel (%p1287_p2) target bundleno = 676 (0x2a4), region = 48 }
  0x28   : > { %1221 = dma.done.wait (%p1293_p3), [#allocation3], 4096  }
  0x29   : > { %1223 = vsyncadd (%p1293_p3), [#allocation3], 4294963200 }
  0x2a   : > { %1225 = dma.done.wait (%p1293_p3), [#allocation5], 2048  }
  0x2b   : > { %1227 = vsyncadd (%p1293_p3), [#allocation5], 4294965248  ;;  %s971_s20 = sshll.u32 %s962_s27, 2  ;;  %v1238_v0 = vmov 0   ;;  %v1094_v1 = vld [vmem:[%s1375_s1 + $0x14] ss:$8 sps:$4 sm:$0xff]   ;;  %v325_v53 = vlaneseq }
  0x2c   : > { %394 = vmatprep.mubr.bf16.mxu0 %v1238_v0  ;;  %p301_p5 = scmp.lt.s32.totalorder %s971_s20, 7  ;;  %v1096_v2 = vld [vmem:[%s1375_s1 + $0x10] ss:$8 sps:$4 sm:$0xff]   ;;  %374 = vmatprep.subr.bf16.mxu0 %v1094_v1  ;;  %v1097_v3 = vld [vmem:[%s1375_s1 + $0x4] ss:$8 sps:$4 sm:$0xff]   ;;  %vm355_vm0 = vcmask 261120  }
  0x2d   : > { %375 = vmatpush1.bf16.msra.mxu0 %v1096_v2  ;;  %v1099_v4 = vld [vmem:[%s1375_s1] ss:$8 sps:$4 sm:$0xff]   ;;  %v1100_v7 = vld [vmem:[#allocation2 + $0x74] ss:$8 sps:$4 sm:$0xff]   ;;  %v1102_v8 = vld [vmem:[#allocation2 + $0x70] ss:$8 sps:$4 sm:$0xff]  }
  0x2e   : > { %s1386_s20 = smov (!%p301_p5, %s971_s20), 7  ;;  %376 = vmatprep.subr.bf16.mxu0 %v1097_v3  ;;  %631 = vmatprep.subr.bf16.mxu1 %v1100_v7  ;;  %v1103_v10 = vld [vmem:[#allocation2 + $0x64] ss:$8 sps:$4 sm:$0xff]   ;;  %v1105_v11 = vld [vmem:[#allocation2 + $0x60] ss:$8 sps:$4 sm:$0xff]   ;;  %v1148_v43 = vld [vmem:[#allocation4 + $0x78] sm:$0xff]  }
  0x2f   : > { %s972_s21 = sshll.u32 %s1386_s20, 3  ;;  %632 = vmatpush1.bf16.msra.mxu1 %v1102_v8  ;;  %v1106_v12 = vld [vmem:[#allocation2 + $0x54] ss:$8 sps:$4 sm:$0xff]   ;;  %v1108_v15 = vld [vmem:[#allocation2 + $0x50] ss:$8 sps:$4 sm:$0xff]   ;;  %v1152_v47 = vld [vmem:[#allocation4 + $0x68] sm:$0xff]  }
  0x30   : > { %s304_s28 = scalar_lea.vmem %s1374_s0, %s972_s21  ;;  %633 = vmatprep.subr.bf16.mxu1 %v1103_v10  ;;  %v1109_v16 = vld [vmem:[#allocation2 + $0x44] ss:$8 sps:$4 sm:$0xff]   ;;  %v1111_v18 = vld [vmem:[#allocation2 + $0x40] ss:$8 sps:$4 sm:$0xff]   ;;  %v1112_v19 = vld [vmem:[#allocation2 + $0x34] ss:$8 sps:$4 sm:$0xff]   ;;  %s310_s19 = scalar_lea.vmem %s1381_s7, %s972_s21 }
  0x31   : > { %v313_v5 = vld [vmem:[%s304_s28] sm:$0xff]  ;;  %v314_v6 = vld [vmem:[%s304_s28 + $0x8] sm:$0xff]  ;;  %377 = vmatpush1.bf16.msra.mxu0 %v1099_v4  ;;  %v315_v13 = vld [vmem:[%s304_s28 + $0x10] sm:$0xff]  ;;  %v326_v54 = vshrl.u32 %v325_v53, 7 }
  0x32   : > { %v317_v9 = vpack.c.bf16 %v314_v6, %v313_v5  ;;  %v316_v14 = vld [vmem:[%s304_s28 + $0x18] sm:$0xff]  ;;  %v1115_v21 = vld [vmem:[#allocation2 + $0x24] ss:$8 sps:$4 sm:$0xff]   ;;  %v1117_v22 = vld [vmem:[#allocation2 + $0x20] ss:$8 sps:$4 sm:$0xff]   ;;  %1032 = vmatprep.subr.bf16.mxu0 %v1148_v43 }
  0x33   : > { %634 = vmatpush1.bf16.msra.mxu1 %v1105_v11  ;;  %v318_v17 = vpack.c.bf16 %v316_v14, %v315_v13  ;;  %v1114_v20 = vld [vmem:[#allocation2 + $0x30] ss:$8 sps:$4 sm:$0xff]   ;;  %v1118_v23 = vld [vmem:[#allocation2 + $0x14] ss:$8 sps:$4 sm:$0xff]   ;;  %v1121_v25 = vld [vmem:[#allocation2 + $0x4] ss:$8 sps:$4 sm:$0xff]  }
  0x34   : > { %979 = vmatmul.mubr.msk.bf16.vlgmr.msra.gmra.mxu0 %vm355_vm0, %v317_v9  ;;  %635 = vmatprep.subr.bf16.mxu1 %v1106_v12  ;;  %v1120_v24 = vld [vmem:[#allocation2 + $0x10] ss:$8 sps:$4 sm:$0xff]   ;;  %v1123_v26 = vld [vmem:[#allocation2] ss:$8 sps:$4 sm:$0xff]   ;;  %v1124_v27 = vld [vmem:[#allocation2 + $0xf4] ss:$8 sps:$4 sm:$0xff]  }
  0x35   : > { %404 = vmatprep.mubr.bf16.mxu0 %v1238_v0  ;;  %v1126_v28 = vld [vmem:[#allocation2 + $0xf0] ss:$8 sps:$4 sm:$0xff]   ;;  %v1127_v29 = vld [vmem:[#allocation2 + $0xe4] ss:$8 sps:$4 sm:$0xff]   ;;  %v1129_v30 = vld [vmem:[#allocation2 + $0xe0] ss:$8 sps:$4 sm:$0xff]  }
  0x36   : > { %v1130_v31 = vld [vmem:[#allocation2 + $0xd4] ss:$8 sps:$4 sm:$0xff]   ;;  %v1132_v32 = vld [vmem:[#allocation2 + $0xd0] ss:$8 sps:$4 sm:$0xff]   ;;  %v1133_v33 = vld [vmem:[#allocation2 + $0xc4] ss:$8 sps:$4 sm:$0xff]  }
  0x37   : > { %636 = vmatpush1.bf16.msra.mxu1 %v1108_v15  ;;  %v1135_v34 = vld [vmem:[#allocation2 + $0xc0] ss:$8 sps:$4 sm:$0xff]   ;;  %v1136_v35 = vld [vmem:[#allocation2 + $0xb4] ss:$8 sps:$4 sm:$0xff]   ;;  %v1138_v36 = vld [vmem:[#allocation2 + $0xb0] ss:$8 sps:$4 sm:$0xff]  }
  0x38   : > { %637 = vmatprep.subr.bf16.mxu1 %v1109_v16  ;;  %v1139_v37 = vld [vmem:[#allocation2 + $0xa4] ss:$8 sps:$4 sm:$0xff]   ;;  %v1141_v38 = vld [vmem:[#allocation2 + $0xa0] ss:$8 sps:$4 sm:$0xff]   ;;  %v1142_v39 = vld [vmem:[#allocation2 + $0x94] ss:$8 sps:$4 sm:$0xff]  }
  0x39   : > { %v1144_v40 = vld [vmem:[#allocation2 + $0x90] ss:$8 sps:$4 sm:$0xff]   ;;  %v1145_v41 = vld [vmem:[#allocation2 + $0x84] ss:$8 sps:$4 sm:$0xff]   ;;  %v1147_v42 = vld [vmem:[#allocation2 + $0x80] ss:$8 sps:$4 sm:$0xff]  }
  0x3a   : > { %v1149_v44 = vld [vmem:[#allocation4 + $0x38] sm:$0xff]   ;;  %v1150_v45 = vld [vmem:[#allocation4 + $0x70] sm:$0xff]   ;;  %v1153_v48 = vld [vmem:[#allocation4 + $0x28] sm:$0xff]   ;;  %v331_v55 = vsub.s32 1, %v326_v54  ;;  %v327_v56 = vsub.s32 0, %v326_v54 }
  0x3b   : > { %638 = vmatpush1.bf16.msra.mxu1 %v1111_v18  ;;  %1033 = vmatpush3.bf16.msra.mxu0 %v1149_v44  ;;  %v1151_v46 = vld [vmem:[#allocation4 + $0x30] sm:$0xff]   ;;  %v1154_v49 = vld [vmem:[#allocation4 + $0x60] sm:$0xff]   ;;  %v1156_v51 = vld [vmem:[#allocation4 + $0x58] sm:$0xff]  }
  0x3c   : > { %980 = vmatmul.mubr.msk.bf16.gmra.mxu0 %vm355_vm0, %v318_v17  ;;  %639 = vmatprep.subr.bf16.mxu1 %v1112_v19  ;;  %v1155_v50 = vld [vmem:[#allocation4 + $0x20] sm:$0xff]   ;;  %v1157_v52 = vld [vmem:[#allocation4 + $0x18] sm:$0xff]  }
  0x3d   : > { %1034 = vmatprep.subr.bf16.mxu0 %v1150_v45  ;;  %v323_v57 = vld [vmem:[%s1376_s2] sm:$0x3] }
  0x3e   : > { %v332_v59 = vrot.slane %v323_v57, %v331_v55  ;;  %v328_v60 = vrot.slane %v323_v57, %v327_v56 }
  0x3f   : > { %640 = vmatpush1.bf16.msra.mxu1 %v1114_v20  ;;  %1035 = vmatpush3.bf16.msra.mxu0 %v1151_v46 }
  0x40   : > { %641 = vmatprep.subr.bf16.mxu1 %v1115_v21  ;;  %1036 = vmatprep.subr.bf16.mxu0 %v1152_v47 }
  0x43   : > { %642 = vmatpush1.bf16.msra.mxu1 %v1117_v22  ;;  %1037 = vmatpush3.bf16.msra.mxu0 %v1153_v48 }
  0x44   : > { %643 = vmatprep.subr.bf16.mxu1 %v1118_v23  ;;  %1038 = vmatprep.subr.bf16.mxu0 %v1154_v49 }
  0x47   : > { %644 = vmatpush1.bf16.msra.mxu1 %v1120_v24  ;;  %1039 = vmatpush3.bf16.msra.mxu0 %v1155_v50  ;;  %v1158_v24 = vld [vmem:[#allocation4 + $0x50] sm:$0xff]  }
  0x48   : > { %645 = vmatprep.subr.bf16.mxu1 %v1121_v25  ;;  %1040 = vmatprep.subr.bf16.mxu0 %v1156_v51  ;;  %v1159_v25 = vld [vmem:[#allocation4 + $0x10] sm:$0xff]  }
  0x4b   : > { %646 = vmatpush1.bf16.msra.mxu1 %v1123_v26  ;;  %1041 = vmatpush3.bf16.msra.mxu0 %v1157_v52  ;;  %v1160_v26 = vld [vmem:[#allocation4 + $0x48] sm:$0xff]  }
  0x4c   : > { %647 = vmatprep.subr.bf16.mxu1 %v1124_v27  ;;  %1042 = vmatprep.subr.bf16.mxu0 %v1158_v24  ;;  %v1161_v27 = vld [vmem:[#allocation4 + $0x8] sm:$0xff]  }
  0x4f   : > { %648 = vmatpush2.bf16.msra.mxu1 %v1126_v28  ;;  %1043 = vmatpush3.bf16.msra.mxu0 %v1159_v25  ;;  %v1162_v28 = vld [vmem:[#allocation4 + $0x40] sm:$0xff]  }
  0x50   : > { %649 = vmatprep.subr.bf16.mxu1 %v1127_v29  ;;  %1044 = vmatprep.subr.bf16.mxu0 %v1160_v26  ;;  %v1163_v29 = vld [vmem:[#allocation4] sm:$0xff]  }
  0x53   : > { %650 = vmatpush2.bf16.msra.mxu1 %v1129_v30  ;;  %1045 = vmatpush3.bf16.msra.mxu0 %v1161_v27  ;;  %v459_v30 = vld [vmem:[%s1378_s4] sm:$0x3] }
  0x54   : > { %651 = vmatprep.subr.bf16.mxu1 %v1130_v31  ;;  %1046 = vmatprep.subr.bf16.mxu0 %v1162_v28 }
  0x57   : > { %652 = vmatpush2.bf16.msra.mxu1 %v1132_v32  ;;  %1047 = vmatpush3.bf16.msra.mxu0 %v1163_v29  ;;  %v468_v32 = vrot.slane %v459_v30, %v331_v55 }
  0x58   : > { %653 = vmatprep.subr.bf16.mxu1 %v1133_v33  ;;  %v464_v33 = vrot.slane %v459_v30, %v327_v56 }
  0x5b   : > { %654 = vmatpush2.bf16.msra.mxu1 %v1135_v34 }
  0x5c   : > { %655 = vmatprep.subr.bf16.mxu1 %v1136_v35 }
  0x5f   : > { %656 = vmatpush2.bf16.msra.mxu1 %v1138_v36 }
  0x60   : > { %657 = vmatprep.subr.bf16.mxu1 %v1139_v37 }
  0x63   : > { %658 = vmatpush2.bf16.msra.mxu1 %v1141_v38 }
  0x64   : > { %659 = vmatprep.subr.bf16.mxu1 %v1142_v39 }
  0x67   : > { %660 = vmatpush2.bf16.msra.mxu1 %v1144_v40 }
  0x68   : > { %661 = vmatprep.subr.bf16.mxu1 %v1145_v41 }
  0x6b   : > { %662 = vmatpush2.bf16.msra.mxu1 %v1147_v42 }
  0xf4   : > { %v396_v58 = vpop.f32.mrf.mxu0 }
  0xf5   : > { %v397_v1 = vadd.f32 %v396_v58, %v328_v60 }
  0xf6   : > { %v398_v61 = vpop.f32.mrf.mxu0 }
  0xf7   : > { %v399_v63 = vadd.f32 %v398_v61, %v332_v59  ;;  %v415_v8 = vmax.f32 %v397_v1, 0.0 }
  0xf8   : > { %v400_v62 = vpop.f32.mrf.mxu0 }
  0xf9   : > { %v401_v0 = vadd.f32 %v400_v62, %v328_v60  ;;  %v416_v6 = vmax.f32 %v399_v63, 0.0  ;;  %v1013_v62 = vld [vmem:[%s1380_s6] ss:$0 sm:$0xff] }
  0xfa   : > { %v402_v2 = vpop.f32.mrf.mxu0 }
  0xfb   : > { %v403_v3 = vadd.f32 %v402_v2, %v332_v59  ;;  %v417_v4 = vmax.f32 %v401_v0, 0.0 }
  0xfc   : > { %v406_v5 = vpop.f32.mrf.mxu0 }
  0xfd   : > { %v418_v7 = vmax.f32 %v403_v3, 0.0  ;;  %v423_v11 = vpack.c.bf16 %v417_v4, %v415_v8  ;;  %v407_v15 = vadd.f32 %v406_v5, %v328_v60 }
  0xfe   : > { %v408_v9 = vpop.f32.mrf.mxu0 }
  0xff   : > { %v424_v10 = vpack.c.bf16 %v418_v7, %v416_v6  ;;  %v409_v13 = vadd.f32 %v408_v9, %v332_v59  ;;  %v419_v21 = vmax.f32 %v407_v15, 0.0 }
 0x100   : > { %v410_v12 = vpop.f32.mrf.mxu0 }
 0x101   : > { %v411_v14 = vadd.f32 %v410_v12, %v328_v60  ;;  %663 = vmatprep.mubr.bf16.mxu1 %v424_v10  ;;  %v420_v19 = vmax.f32 %v409_v13, 0.0 }
 0x102   : > { %v412_v16 = vpop.f32.mrf.mxu0  ;;  %664 = vmatmul.mubr.bf16.vlgmr.msra.gmra.mxu1 %v423_v11 }
 0x103   : > { %v413_v17 = vadd.f32 %v412_v16, %v332_v59  ;;  %v421_v18 = vmax.f32 %v411_v14, 0.0 }
 0x105   : > { %v422_v20 = vmax.f32 %v413_v17, 0.0  ;;  %v425_v23 = vpack.c.bf16 %v421_v18, %v419_v21 }
 0x107   : > { %v426_v22 = vpack.c.bf16 %v422_v20, %v420_v19 }
 0x109   : > { %673 = vmatprep.mubr.bf16.mxu1 %v426_v22 }
 0x10a   : > { %674 = vmatmul.mubr.bf16.gmra.mxu1 %v425_v23 }
 0x1c2   : > { %v665_v31 = vpop.f32.mrf.mxu1 }
 0x1c3   : > { %v666_v38 = vadd.f32 %v665_v31, %v464_v33 }
 0x1c4   : > { %v667_v34 = vpop.f32.mrf.mxu1 }
 0x1c5   : > { %v668_v36 = vadd.f32 %v667_v34, %v468_v32  ;;  %v684_v45 = vmax.f32 %v666_v38, 0.0 }
 0x1c6   : > { %v669_v35 = vpop.f32.mrf.mxu1 }
 0x1c7   : > { %v670_v37 = vadd.f32 %v669_v35, %v464_v33  ;;  %v685_v43 = vmax.f32 %v668_v36, 0.0 }
 0x1c8   : > { %v671_v39 = vpop.f32.mrf.mxu1 }
 0x1c9   : > { %v672_v40 = vadd.f32 %v671_v39, %v468_v32  ;;  %v686_v41 = vmax.f32 %v670_v37, 0.0 }
 0x1ca   : > { %v675_v42 = vpop.f32.mrf.mxu1 }
 0x1cb   : > { %v687_v44 = vmax.f32 %v672_v40, 0.0  ;;  %v692_v48 = vpack.c.bf16 %v686_v41, %v684_v45  ;;  %v676_v52 = vadd.f32 %v675_v42, %v464_v33 }
 0x1cc   : > { %v677_v46 = vpop.f32.mrf.mxu1 }
 0x1cd   : > { %v693_v47 = vpack.c.bf16 %v687_v44, %v685_v43  ;;  %v678_v50 = vadd.f32 %v677_v46, %v468_v32  ;;  %v688_v58 = vmax.f32 %v676_v52, 0.0 }
 0x1ce   : > { %v679_v49 = vpop.f32.mrf.mxu1 }
 0x1cf   : > { %v680_v51 = vadd.f32 %v679_v49, %v464_v33  ;;  %863 = vmatprep.mubr.bf16.mxu0 %v693_v47  ;;  %v689_v56 = vmax.f32 %v678_v50, 0.0 }
 0x1d0   : > { %v681_v53 = vpop.f32.mrf.mxu1  ;;  %864 = vmatmul.mubr.bf16.vlgmr.msra.gmra.mxu0 %v692_v48 }
 0x1d1   : > { %v682_v54 = vadd.f32 %v681_v53, %v468_v32  ;;  %v690_v55 = vmax.f32 %v680_v51, 0.0 }
 0x1d3   : > { %v691_v57 = vmax.f32 %v682_v54, 0.0  ;;  %v694_v60 = vpack.c.bf16 %v690_v55, %v688_v58 }
 0x1d5   : > { %v695_v59 = vpack.c.bf16 %v691_v57, %v689_v56 }
 0x1d7   : > { %871 = vmatprep.mubr.bf16.mxu0 %v695_v59 }
 0x1d8   : > { %872 = vmatmul.mubr.bf16.gmra.mxu0 %v694_v60 }
 0x290   : > { %v1048_v61 = vpop.f32.mrf.mxu0 }
 0x292   : > { %v1049_v63 = vpop.f32.mrf.mxu0 }
 0x293   : > { %v1050_v0 = vadd.f32 %v1049_v63, %v1048_v61 }
 0x294   : > { %v1051_v1 = vpop.f32.mrf.mxu0 }
 0x295   : > { %v866_v2 = vadd.f32 %v1050_v0, %v1013_v62 }
 0x296   : > { %v1052_v3 = vpop.f32.mrf.mxu0 }
 0x297   : > { %880 = vst [vmem:[%s310_s19] sm:$0xff] %v866_v2  ;;  %v1053_v4 = vadd.f32 %v1052_v3, %v1051_v1 }
 0x298   : > { %v1054_v5 = vpop.f32.mrf.mxu0 }
 0x299   : > { %v869_v6 = vadd.f32 %v1053_v4, %v1013_v62 }
 0x29a   : > { %v1055_v7 = vpop.f32.mrf.mxu0 }
 0x29b   : > { %881 = vst [vmem:[%s310_s19 + $0x8] sm:$0xff] %v869_v6  ;;  %v1056_v8 = vadd.f32 %v1055_v7, %v1054_v5 }
 0x29c   : > { %v1057_v9 = vpop.f32.mrf.mxu0 }
 0x29d   : > { %v874_v10 = vadd.f32 %v1056_v8, %v1013_v62 }
 0x29e   : > { %v1058_v11 = vpop.f32.mrf.mxu0 }
 0x29f   : > { %882 = vst [vmem:[%s310_s19 + $0x10] sm:$0xff] %v874_v10  ;;  %v1059_v12 = vadd.f32 %v1058_v11, %v1057_v9 }
 0x2a1   : > { %v877_v13 = vadd.f32 %v1059_v12, %v1013_v62 }
 0x2a3   : > { %883 = vst [vmem:[%s310_s19 + $0x18] sm:$0xff] %v877_v13 }
 0x2a4 PF: > { %s19_s24 = sadd.s32 1, %s1230_s24  }
 0x2a5   : > { %p16_p2 = scmp.ge.s32.totalorder %s19_s24, 4  }
 0x2a7   :  { %18 = sbr.rel (!%p16_p2) target bundleno = 2 (0x2), region = 87 }
 0x2ac   :  { %906 = vsyncpa [#allocation3], 1 }
 0x2ad   :  { %908 = vsyncpa [#allocation3 + $0x1], 1 }
 0x2ae   :  { %909 = vsyncpa [#allocation5], 1 }

</bundles_post_ra>
